<compile_context>
chip_gen: v7x
topology: tpu7x:2x2x1
jax: 0.10.0
libtpu: 0.0.40
codegen_flags: <defaults>
</compile_context>

<pallas_src>
import jax
import jax.numpy as jnp
from jax.experimental import pallas as pl
from jax.experimental.pallas import tpu as pltpu

LANE = 128


def _round_up(n, m):
    return ((n + m - 1) // m) * m


def mlp_swiglu_kernel(x_ref, wg_ref, bg_ref, wv_ref, bv_ref, w2_ref, b2_ref, o_ref):
    """One batch tile of the SwiGLU MLP head.

    x_ref  : [TB, E]  bf16   activations (batch tile)
    wg_ref : [E, H]   bf16   gate half of linear1 (pre-transposed)
    bg_ref : [1, H]   f32
    wv_ref : [E, H]   bf16   value half of linear1 (pre-transposed)
    bv_ref : [1, H]   f32
    w2_ref : [H, Cp]  bf16   linear2 (pre-transposed, lane-padded to Cp=128k)
    b2_ref : [1, Cp]  f32
    o_ref  : [TB, Cp] f32    lane-dense output (sliced to C outside)
    """
    x = x_ref[...]

    # Two lane-aligned MXU matmuls (bf16 in, f32 accumulate) instead of one
    # [TB, 2H] matmul followed by a split at lane 64 inside a vreg.
    a = jnp.dot(x, wg_ref[...], preferred_element_type=jnp.float32) + bg_ref[...]
    b = jnp.dot(x, wv_ref[...], preferred_element_type=jnp.float32) + bv_ref[...]

    # SwiGLU epilogue in f32 on the VPU/EUP.
    h = (a * jax.nn.sigmoid(a)) * b

    # Second matmul: bf16 MXU operands, f32 accumulate, lane-dense [TB, 128] store.
    y = jnp.dot(h.astype(w2_ref.dtype), w2_ref[...], preferred_element_type=jnp.float32)
    o_ref[...] = (y + b2_ref[...]).astype(o_ref.dtype)


def mlp_classifier_forward(x, w1, b1, w2, b2, *, tile_b=128, mxu_dtype=jnp.bfloat16):
    """Forward pass of MLPClassifier.

    x : [B, E] float32
    w1: [2H, E], b1: [2H]   (torch nn.Linear layout)
    w2: [C, H],  b2: [C]
    returns [B, C] float32
    """
    B, E = x.shape
    two_h = w1.shape[0]
    H = two_h // 2
    C = w2.shape[0]

    # ---- wrapper-side layout plumbing (no extra FLOPs) ----------------------
    # Pre-split linear1 into gate/value halves, pre-transpose for row-major
    # MXU matmuls, cast MXU operands to bf16. Biases stay f32.
    wg = jnp.asarray(w1[:H, :].T, dtype=mxu_dtype)                  # [E, H]
    wv = jnp.asarray(w1[H:, :].T, dtype=mxu_dtype)                  # [E, H]
    bg = b1[:H].reshape(1, H).astype(jnp.float32)
    bv = b1[H:].reshape(1, H).astype(jnp.float32)

    # Pad the classifier dim to a full 128-lane width so stores are unmasked
    # and the second matmul uses the MXU N dimension fully.
    Cp = _round_up(C, LANE)
    w2_t = jnp.zeros((H, Cp), dtype=mxu_dtype).at[:, :C].set(w2.T.astype(mxu_dtype))
    b2_p = jnp.zeros((1, Cp), dtype=jnp.float32).at[:, :C].set(
        b2.reshape(1, C).astype(jnp.float32))

    # Big batch tiles keep the MXU M dim full; pad B to a tile multiple.
    tile_b = min(tile_b, _round_up(B, 8))
    Bp = _round_up(B, tile_b)
    x_p = x.astype(mxu_dtype)
    if Bp != B:
        x_p = jnp.pad(x_p, ((0, Bp - B), (0, 0)))

    out = pl.pallas_call(
        mlp_swiglu_kernel,
        out_shape=jax.ShapeDtypeStruct((Bp, Cp), jnp.float32),
        grid_spec=pltpu.PrefetchScalarGridSpec(
            num_scalar_prefetch=0,
            grid=(Bp // tile_b,),
            in_specs=[
                pl.BlockSpec((tile_b, E), lambda i: (i, 0)),   # x tile
                pl.BlockSpec((E, H), lambda i: (0, 0)),        # W1 gate half (resident)
                pl.BlockSpec((1, H), lambda i: (0, 0)),        # b1 gate half
                pl.BlockSpec((E, H), lambda i: (0, 0)),        # W1 value half (resident)
                pl.BlockSpec((1, H), lambda i: (0, 0)),        # b1 value half
                pl.BlockSpec((H, Cp), lambda i: (0, 0)),       # W2 (padded, resident)
                pl.BlockSpec((1, Cp), lambda i: (0, 0)),       # b2 (padded)
            ],
            out_specs=pl.BlockSpec((tile_b, Cp), lambda i: (i, 0)),
        ),
        compiler_params=pltpu.CompilerParams(
            # Batch axis is embarrassingly parallel -> megacore sharding on v7x.
            dimension_semantics=("parallel",),
            vmem_limit_bytes=32 * 1024 * 1024,
        ),
    )(x_p, wg, bg, wv, bv, w2_t, b2_p)

    return out[:B, :C]


def mlp_classifier_reference(x, w1, b1, w2, b2):
    z = x @ w1.T + b1
    H = z.shape[-1] // 2
    a, b = z[:, :H], z[:, H:]
    h = (a * jax.nn.sigmoid(a)) * b
    return h @ w2.T + b2


if __name__ == "__main__":
    # Shapes consistent with the module:
    #   embedding_dimensions = 32, hidden_ratio = 2 -> hidden = 64, 2*hidden = 128
    #   num_classes = 16.  Batch 256 = two 128-row tiles (one per v7x TensorCore).
    E = 32
    hidden_ratio = 2
    H = hidden_ratio * E          # 64
    C = 16
    B = 256

    key = jax.random.PRNGKey(0)
    kx, kw1, kb1, kw2, kb2 = jax.random.split(key, 5)

    x = jax.random.normal(kx, (B, E), dtype=jnp.float32)

    # Deterministic "Linear" parameters (torch-default-like uniform bounds).
    bound1 = 1.0 / (E ** 0.5)
    w1 = jax.random.uniform(kw1, (2 * H, E), minval=-bound1, maxval=bound1, dtype=jnp.float32)
    b1 = jax.random.uniform(kb1, (2 * H,), minval=-bound1, maxval=bound1, dtype=jnp.float32)

    bound2 = 1.0 / (H ** 0.5)
    w2 = jax.random.uniform(kw2, (C, H), minval=-bound2, maxval=bound2, dtype=jnp.float32)
    b2 = jax.random.uniform(kb2, (C,), minval=-bound2, maxval=bound2, dtype=jnp.float32)

    out = mlp_classifier_forward(x, w1, b1, w2, b2, tile_b=128)
    out = jax.block_until_ready(out)

    ref = mlp_classifier_reference(x, w1, b1, w2, b2)
    assert out.shape == (B, C), out.shape
    max_err = float(jnp.max(jnp.abs(out - ref)))
    # bf16 MXU operands (f32 accumulation) vs. f32 reference -> loose tolerance.
    assert jnp.allclose(out, ref, atol=5e-2, rtol=5e-2), f"mismatch, max abs err {max_err}"

    print("KERNEL_OK")
</pallas_src>

<mosaic_0001>
module attributes {stable_mosaic.version = 11 : i64} {
  func.func @mlp_swiglu_kernel(%arg0: i32, %arg1: memref<128x32xbf16, #tpu.memory_space<vmem>>, %arg2: memref<32x64xbf16, #tpu.memory_space<vmem>>, %arg3: memref<1x64xf32, #tpu.memory_space<vmem>>, %arg4: memref<32x64xbf16, #tpu.memory_space<vmem>>, %arg5: memref<1x64xf32, #tpu.memory_space<vmem>>, %arg6: memref<64x128xbf16, #tpu.memory_space<vmem>>, %arg7: memref<1x128xf32, #tpu.memory_space<vmem>>, %arg8: memref<128x128xf32, #tpu.memory_space<vmem>>) attributes {dimension_semantics = [#tpu.dimension_semantics<parallel>], iteration_bounds = array<i64: 2>, scalar_prefetch = 0 : i64, scratch_operands = 0 : i64, tpu.core_type = #tpu.core_type<tc>, window_params = [{transform_indices = @transform_0, window_bounds = array<i64: 128, 32>}, {pipeline_mode = #tpu.pipeline_mode<synchronous>, transform_indices = @transform_1, window_bounds = array<i64: 32, 64>}, {pipeline_mode = #tpu.pipeline_mode<synchronous>, transform_indices = @transform_2, window_bounds = array<i64: 1, 64>}, {pipeline_mode = #tpu.pipeline_mode<synchronous>, transform_indices = @transform_3, window_bounds = array<i64: 32, 64>}, {pipeline_mode = #tpu.pipeline_mode<synchronous>, transform_indices = @transform_4, window_bounds = array<i64: 1, 64>}, {pipeline_mode = #tpu.pipeline_mode<synchronous>, transform_indices = @transform_5, window_bounds = array<i64: 64, 128>}, {pipeline_mode = #tpu.pipeline_mode<synchronous>, transform_indices = @transform_6, window_bounds = array<i64: 1, 128>}, {transform_indices = @transform_7, window_bounds = array<i64: 128, 128>}]} {
    %c0 = arith.constant 0 : index
    %c0_0 = arith.constant 0 : index
    %0 = vector.load %arg1[%c0, %c0_0] : memref<128x32xbf16, #tpu.memory_space<vmem>>, vector<128x32xbf16>
    %c0_1 = arith.constant 0 : index
    %c0_2 = arith.constant 0 : index
    %1 = vector.load %arg2[%c0_1, %c0_2] : memref<32x64xbf16, #tpu.memory_space<vmem>>, vector<32x64xbf16>
    %cst = arith.constant dense<0.000000e+00> : vector<128x64xf32>
    %2 = tpu.matmul %0, %1, %cst {dimension_numbers = #tpu.dot_dimension_numbers<[1], [0], [0], [1], [0, 0, 1, 1], [], []>} : vector<128x32xbf16>, vector<32x64xbf16>, vector<128x64xf32> -> vector<128x64xf32>
    %c0_3 = arith.constant 0 : index
    %c0_4 = arith.constant 0 : index
    %3 = vector.load %arg3[%c0_3, %c0_4] : memref<1x64xf32, #tpu.memory_space<vmem>>, vector<1x64xf32>
    %4 = vector.broadcast %3 : vector<1x64xf32> to vector<128x64xf32>
    %5 = arith.addf %2, %4 : vector<128x64xf32>
    %c0_5 = arith.constant 0 : index
    %c0_6 = arith.constant 0 : index
    %6 = vector.load %arg4[%c0_5, %c0_6] : memref<32x64xbf16, #tpu.memory_space<vmem>>, vector<32x64xbf16>
    %cst_7 = arith.constant dense<0.000000e+00> : vector<128x64xf32>
    %7 = tpu.matmul %0, %6, %cst_7 {dimension_numbers = #tpu.dot_dimension_numbers<[1], [0], [0], [1], [0, 0, 1, 1], [], []>} : vector<128x32xbf16>, vector<32x64xbf16>, vector<128x64xf32> -> vector<128x64xf32>
    %c0_8 = arith.constant 0 : index
    %c0_9 = arith.constant 0 : index
    %8 = vector.load %arg5[%c0_8, %c0_9] : memref<1x64xf32, #tpu.memory_space<vmem>>, vector<1x64xf32>
    %9 = vector.broadcast %8 : vector<1x64xf32> to vector<128x64xf32>
    %10 = arith.addf %7, %9 : vector<128x64xf32>
    %11 = arith.negf %5 : vector<128x64xf32>
    %12 = math.exp %11 : vector<128x64xf32>
    %cst_10 = arith.constant 1.000000e+00 : f32
    %13 = vector.broadcast %cst_10 : f32 to vector<128x64xf32>
    %14 = arith.addf %13, %12 : vector<128x64xf32>
    %15 = arith.divf %13, %14 : vector<128x64xf32>
    %16 = arith.mulf %5, %15 : vector<128x64xf32>
    %17 = arith.mulf %16, %10 : vector<128x64xf32>
    %18 = arith.truncf %17 : vector<128x64xf32> to vector<128x64xbf16>
    %c0_11 = arith.constant 0 : index
    %c0_12 = arith.constant 0 : index
    %19 = vector.load %arg6[%c0_11, %c0_12] : memref<64x128xbf16, #tpu.memory_space<vmem>>, vector<64x128xbf16>
    %cst_13 = arith.constant dense<0.000000e+00> : vector<128x128xf32>
    %20 = tpu.matmul %18, %19, %cst_13 {dimension_numbers = #tpu.dot_dimension_numbers<[1], [0], [0], [1], [0, 0, 1, 1], [], []>} : vector<128x64xbf16>, vector<64x128xbf16>, vector<128x128xf32> -> vector<128x128xf32>
    %c0_14 = arith.constant 0 : index
    %c0_15 = arith.constant 0 : index
    %21 = vector.load %arg7[%c0_14, %c0_15] : memref<1x128xf32, #tpu.memory_space<vmem>>, vector<1x128xf32>
    %22 = vector.broadcast %21 : vector<1x128xf32> to vector<128x128xf32>
    %23 = arith.addf %20, %22 : vector<128x128xf32>
    %c0_16 = arith.constant 0 : index
    %c0_17 = arith.constant 0 : index
    %24 = vector.load %arg8[%c0_16, %c0_17] : memref<128x128xf32, #tpu.memory_space<vmem>>, vector<128x128xf32>
    tpu.vector_store %arg8[%c0_16, %c0_17], %23 {strides = array<i32>} : memref<128x128xf32, #tpu.memory_space<vmem>>, vector<128x128xf32>,
    return
  }
  func.func @transform_0(%arg0: i32) -> (i32, i32) {
    %c0_i32 = arith.constant 0 : i32
    %c0_i32_0 = arith.constant 0 : i32
    return %arg0, %c0_i32 : i32, i32
  }
  func.func @transform_1(%arg0: i32) -> (i32, i32) {
    %c0_i32 = arith.constant 0 : i32
    %c0_i32_0 = arith.constant 0 : i32
    %c0_i32_1 = arith.constant 0 : i32
    return %c0_i32, %c0_i32_0 : i32, i32
  }
  func.func @transform_2(%arg0: i32) -> (i32, i32) {
    %c0_i32 = arith.constant 0 : i32
    %c0_i32_0 = arith.constant 0 : i32
    %c0_i32_1 = arith.constant 0 : i32
    return %c0_i32, %c0_i32_0 : i32, i32
  }
  func.func @transform_3(%arg0: i32) -> (i32, i32) {
    %c0_i32 = arith.constant 0 : i32
    %c0_i32_0 = arith.constant 0 : i32
    %c0_i32_1 = arith.constant 0 : i32
    return %c0_i32, %c0_i32_0 : i32, i32
  }
  func.func @transform_4(%arg0: i32) -> (i32, i32) {
    %c0_i32 = arith.constant 0 : i32
    %c0_i32_0 = arith.constant 0 : i32
    %c0_i32_1 = arith.constant 0 : i32
    return %c0_i32, %c0_i32_0 : i32, i32
  }
  func.func @transform_5(%arg0: i32) -> (i32, i32) {
    %c0_i32 = arith.constant 0 : i32
    %c0_i32_0 = arith.constant 0 : i32
    %c0_i32_1 = arith.constant 0 : i32
    return %c0_i32, %c0_i32_0 : i32, i32
  }
  func.func @transform_6(%arg0: i32) -> (i32, i32) {
    %c0_i32 = arith.constant 0 : i32
    %c0_i32_0 = arith.constant 0 : i32
    %c0_i32_1 = arith.constant 0 : i32
    return %c0_i32, %c0_i32_0 : i32, i32
  }
  func.func @transform_7(%arg0: i32) -> (i32, i32) {
    %c0_i32 = arith.constant 0 : i32
    %c0_i32_0 = arith.constant 0 : i32
    return %arg0, %c0_i32 : i32, i32
  }
}

</mosaic_0001>

<bundles_post_ra>
// kernel: tpu_custom_call.1
= control target key start
LH: loop header
LB: loop body
LE: loop exit
PB: predicated region body
PF: predicated region fallthrough
CT: control target
= control target key end

     0   :  { %12 = vsyncpa [#allocation3], 0  ;;  %s1682_s0 = inlined_call_operand.vmem [shape: bf16[256,32], index: 0, kind: input, shape index: {}]   ;;  %s1683_s1 = inlined_call_operand.vmem [shape: bf16[32,64], index: 1, kind: input, shape index: {}]   ;;  %s1684_s2 = inlined_call_operand.vmem [shape: f32[1,64], index: 2, kind: input, shape index: {}]   ;;  %s1685_s3 = inlined_call_operand.vmem [shape: bf16[32,64], index: 3, kind: input, shape index: {}]   ;;  %s1686_s4 = inlined_call_operand.vmem [shape: f32[1,64], index: 4, kind: input, shape index: {}]   ;;  %s1687_s5 = inlined_call_operand.vmem [shape: bf16[64,128], index: 5, kind: input, shape index: {}]   ;;  %s1688_s6 = inlined_call_operand.vmem [shape: f32[1,128], index: 6, kind: input, shape index: {}]   ;;  %s1689_s7 = inlined_call_operand.hbm [shape: f32[256,128], index: 7, kind: output, shape index: {}]  }
   0x1   :  { %14 = vsyncpa [#allocation3 + $0x1], 0  ;;  %s1391_s24 = smov 0   ;;  %s1393_s25 = smov 0  }
   0x2   :  { %s1395_s26 = smov 0   ;;  %s1397_s27 = smov 0  }
   0x3 LB: > { %s1412_s28 = sadd.s32 4294967295, %s1346_s27   ;;  %s991_s29 = sadd.s32 4294967294, %s1346_s27   ;;  %s1346_s27 = sphi %s1397_s27, %s1695_s27   ;;  %s1342_s26 = sphi %s1395_s26, %s1694_s26   ;;  %s1338_s25 = sphi %s1393_s25, %s1693_s25   ;;  %s1334_s24 = sphi %s1391_s24, %s1692_s24  }
   0x4   : > { %s1416_s30 = sadd.s32 1, %s1346_s27   ;;  %s179_s8 = sadd.s32 1, %s1342_s26 }
   0x5   : > { %s176_s9 = ssub.s32 %s1346_s27, %s1416_s30  ;;  %p189_p0 = scmp.ne.s32.totalorder %s1342_s26, %s1338_s25 }
   0x6   : > { %p177_p1 = scmp.eq.s32.totalorder %s176_s9, 0  ;;  %p190_p2 = scmp.eq.s32.totalorder %s1412_s28, 1 }
   0x7   : > { %p195_p3 = scmp.ne.s32.totalorder %s1338_s25, %s1334_s24  ;;  %p196_p4 = scmp.eq.s32.totalorder %s991_s29, 1 }
   0x8   : > { %s1427_s10 = scalar_select %p177_p1, %s1342_s26, %s179_s8  }
   0x9   : > { %p1429_p5 = por %p190_p2, %p189_p0  ;;  %p1433_p6 = por %p196_p4, %p195_p3 }
   0xa   : > { %p994_p7 = scmp.ge.s32.totalorder %s1346_s27, 1  ;;  %p241_p8 = scmp.lt.s32.totalorder %s1346_s27, 3 }
   0xc   : > { %p242_p9 = pnand %p994_p7, %p241_p8 }
   0xd   : > { %v1204_v0 = vld [vmem:[%s1683_s1] sm:$0xff] (!%p242_p9)   ;;  %s996_s15 = sshll.u32 (!%p242_p9), %s1412_s28, 4  ;;  %v1205_v1 = vld [vmem:[%s1683_s1 + $0x8] sm:$0xff] (!%p242_p9)   ;;  %vm360_vm0 = vcmask (!%p242_p9), 261120   ;;  %v1218_v14 = vld [vmem:[%s1687_s5 + $0x10] sm:$0xff] (!%p242_p9)   ;;  %vm777_vm1 = vcmask (!%p242_p9), 523264  }
   0xe   : > { %245 = sbr.rel (%p242_p9) target bundleno = 548 (0x224), region = 48  ;;  %p274_p10 = scmp.lt.s32.totalorder (!%p242_p9), %s996_s15, 31  ;;  %1095 = vmatprep.subr.bf16.mxu0 (!%p242_p9), %v1204_v0  ;;  %1159 = vmatprep.subr.bf16.mxu1 (!%p242_p9), %v1204_v0  ;;  %v1214_v2 = vld [vmem:[%s1685_s3] sm:$0xff] (!%p242_p9)   ;;  %v1215_v5 = vld [vmem:[%s1685_s3 + $0x8] sm:$0xff] (!%p242_p9)   ;;  %v1219_v15 = vld [vmem:[%s1687_s5 + $0x18] sm:$0xff] (!%p242_p9)  }
   0xf   : > { %1096 = vmatpush3.bf16.msra.mxu0 (!%p242_p9), %v1204_v0  ;;  %1161 = vmatpush3.bf16.msra.mxu1 (!%p242_p9), %v1204_v0  ;;  %v1216_v12 = vld [vmem:[%s1687_s5] sm:$0xff] (!%p242_p9)   ;;  %v1217_v13 = vld [vmem:[%s1687_s5 + $0x8] sm:$0xff] (!%p242_p9)   ;;  %s270_s29 = sand.u32 (!%p242_p9), 1, %s1338_s25   ;;  %s1348_s21 = smov (!%p242_p9), [#allocation2]  }
  0x10   : > { %1097 = vmatprep.subr.bf16.mxu0 (!%p242_p9), %v1205_v1  ;;  %1160 = vmatprep.subr.bf16.mxu1 (!%p242_p9), %v1205_v1  ;;  %v1486_v16 = vld [vmem:[%s1684_s2] ss:$0 sm:$0xff] (!%p242_p9)  ;;  %s995_s8 = sshll.u32 (!%p242_p9), %s270_s29, 7  ;;  %s1288_s22 = sshll.u32 (!%p242_p9), %s1348_s21, 4  ;;  %s1289_s22 = int_to_ptr.vmem [resolvable:$false] %s1288_s22 }
  0x11   : > { %s1612_s14 = scalar_lea.vmem (!%p242_p9), [#allocation2], %s995_s8 }
  0x12   : > { %s929_s16 = sshll.u32 (!%p242_p9), %s1612_s14, 4  ;;  %s1634_s16 = int_to_ptr.vmem [resolvable:$true] %s929_s16 }
  0x13   : > { %1098 = vmatpush3.bf16.msra.mxu0 (!%p242_p9), %v1205_v1  ;;  %1162 = vmatpush3.bf16.msra.mxu1 (!%p242_p9), %v1205_v1  ;;  %p1291_p0 = scmp.lt.s32.totalorder (!%p242_p9), %s1634_s16, %s1289_s22 }
  0x14   : > { %1115 = vmatprep.subr.bf16.mxu1 (!%p242_p9), %v1214_v2  ;;  %1135 = vmatprep.subr.bf16.mxu0 (!%p242_p9), %v1216_v12 }
  0x15   : > { %s1697_s15 = smov (!%p274_p10, %s996_s15), 31 }
  0x16   : > { %s997_s20 = sshll.u32 %s1697_s15, 2  ;;  %s1062_s15 = sshll.u32 %s1412_s28, 11 }
  0x17   : > { %s277_s23 = scalar_lea.vmem %s1682_s0, %s997_s20  ;;  %s1632_s19 = scalar_lea.hbm %s1689_s7, %s1062_s15 }
  0x18   : > { %v1206_v3 = vld [vmem:[%s277_s23] sm:$0xff]   ;;  %v1208_v6 = vld [vmem:[%s277_s23 + $0x8] sm:$0xff]   ;;  %v1210_v8 = vld [vmem:[%s277_s23 + $0x10] sm:$0xff]   ;;  %s1641_s28 = scalar_lea.sflag [#allocation3], %s270_s29  ;;  %s1284_s20 = scalar_lea.vmem %s1634_s16, 2048 }
  0x19   : > { %v1207_v4 = vld [vmem:[%s277_s23 + $0x20] sm:$0xff]   ;;  %1099 = vmatprep.mubr.msk.bf16.mxu0 %vm360_vm0, %v1206_v3  ;;  %v1209_v7 = vld [vmem:[%s277_s23 + $0x28] sm:$0xff]   ;;  %v1211_v9 = vld [vmem:[%s277_s23 + $0x30] sm:$0xff]   ;;  %p1285_p11 = scmp.ne.s32.totalorder %s1634_s16, %s1284_s20 }
  0x1a   : > { %1107 = vmatprep.mubr.msk.bf16.mxu1 %vm360_vm0, %v1207_v4  ;;  %1100 = vmatmul.mubr.msk.bf16.vlgmr.msra.gmra.mrb[0].mxu0 %vm360_vm0, %v1208_v6  ;;  %v1212_v10 = vld [vmem:[%s277_s23 + $0x18] sm:$0xff]  }
  0x1b   : > { %1108 = vmatmul.mubr.msk.bf16.vlgmr.msra.gmra.mrb[0].mxu1 %vm360_vm0, %v1209_v7  ;;  %1103 = vmatprep.mubr.msk.bf16.mxu0 %vm360_vm0, %v1210_v8  ;;  %v1213_v11 = vld [vmem:[%s277_s23 + $0x38] sm:$0xff]   ;;  %p1286_p12 = pnand %p1285_p11, %p1429_p5  ;;  %s1290_s23 = scalar_lea.vmem %s1289_s22, 4096 }
  0x1c   : > { %1116 = vmatpush3.bf16.msra.mxu1 %v1214_v2  ;;  %1111 = vmatprep.mubr.msk.bf16.mxu1 %vm360_vm0, %v1211_v9  ;;  %p1292_p1 = scmp.lt.s32.totalorder %s1290_s23, %s1284_s20 }
  0x1d   : > { %1117 = vmatprep.subr.bf16.mxu1 %v1215_v5  ;;  %1136 = vmatpush3.bf16.msra.mxu0 %v1216_v12  ;;  %p1287_p13 = pneg %p1286_p12 }
  0x1e   : > { %1137 = vmatprep.subr.bf16.mxu0 %v1217_v13  ;;  %p1293_p2 = por %p1292_p1, %p1291_p0 }
  0x20   : > { %1118 = vmatpush3.bf16.msra.mxu1 %v1215_v5  ;;  %p1294_p3 = pnand %p1293_p2, %p1287_p13 }
  0x21   : > { %1138 = vmatpush3.bf16.msra.mxu0 %v1217_v13 }
  0x22   : > { %1104 = vmatmul.mubr.msk.bf16.gmra.mrb[4].mxu0 %vm360_vm0, %v1212_v10  ;;  %1139 = vmatprep.subr.bf16.mxu0 %v1218_v14 }
  0x23   : > { %1112 = vmatmul.mubr.msk.bf16.gmra.mrb[4].mxu1 %vm360_vm0, %v1213_v11 }
  0x24   : > { %1119 = vmatprep.mubr.msk.bf16.mxu1 %vm360_vm0, %v1206_v3 }
  0x25   : > { %1140 = vmatpush3.bf16.msra.mxu0 %v1218_v14 }
  0x26   : > { %1141 = vmatprep.subr.bf16.mxu0 %v1219_v15 }
  0x29   : > { %1142 = vmatpush3.bf16.msra.mxu0 %v1219_v15 }
  0x2b   : > { %1120 = vmatmul.mubr.msk.bf16.vlgmr.msra.gmra.mrb[8].mxu1 %vm360_vm0, %v1208_v6 }
  0x2c   : > { %1123 = vmatprep.mubr.msk.bf16.mxu1 %vm360_vm0, %v1210_v8 }
  0x33   : > { %1124 = vmatmul.mubr.msk.bf16.gmra.mrb[12].mxu1 %vm360_vm0, %v1212_v10 }
  0x34   : > { %1127 = vmatprep.mubr.msk.bf16.mxu1 %vm360_vm0, %v1207_v4 }
  0x3b   : > { %1128 = vmatmul.mubr.msk.bf16.gmra.mrb[16].mxu1 %vm360_vm0, %v1209_v7 }
  0x3c   : > { %1131 = vmatprep.mubr.msk.bf16.mxu1 %vm360_vm0, %v1211_v9 }
  0x43   : > { %1132 = vmatmul.mubr.msk.bf16.gmra.mrb[20].mxu1 %vm360_vm0, %v1213_v11 }
  0xed   : > { %v1101_v17 = vpop.f32.mrb[0].mxu0 }
  0xee   : > { %v1489_v18 = vadd.f32 %v1101_v17, %v1486_v16  ;;  %v1109_v19 = vpop.f32.mrb[0].mxu1  ;;  %v419_v20 = vpop.f32.mrb[1].mxu0 }
  0xef   : > { %v1492_v21 = vadd.f32 %v1109_v19, %v1486_v16  ;;  %v1495_v22 = vadd.f32 %v1486_v16, %v419_v20  ;;  %v451_v23 = vpop.f32.mrb[1].mxu1  ;;  %v1102_v24 = vpop.f32.mrb[2].mxu0 }
  0xf0   : > { %v1030_v25 = vmul.f32 -1.442695, %v1489_v18  ;;  %v1499_v26 = vadd.f32 %v1486_v16, %v451_v23  ;;  %v1502_v27 = vadd.f32 %v1102_v24, %v1486_v16  ;;  %v1110_v28 = vpop.f32.mrb[2].mxu1  ;;  %v422_v29 = vpop.f32.mrb[3].mxu0  ;;  %v1549_v24 = vld [vmem:[%s1686_s4] ss:$0 sm:$0xff] }
  0xf1   : > { %v1038_v30 = vmul.f32 -1.442695, %v1492_v21  ;;  %v1028_v31 = vmul.f32 -1.442695, %v1495_v22  ;;  %v1507_v32 = vadd.f32 %v1110_v28, %v1486_v16  ;;  %v1510_v33 = vadd.f32 %v1486_v16, %v422_v29  ;;  %v454_v34 = vpop.f32.mrb[3].mxu1 }
  0xf2   : > { %1220 = vpow2.f32 %v1030_v25  ;;  %v1036_v35 = vmul.f32 -1.442695, %v1499_v26  ;;  %v1031_v36 = vmul.f32 -1.442695, %v1502_v27  ;;  %v1515_v37 = vadd.f32 %v1486_v16, %v454_v34 }
  0xf3   : > { %1222 = vpow2.f32 %v1038_v30  ;;  %v1039_v38 = vmul.f32 -1.442695, %v1507_v32  ;;  %v1029_v39 = vmul.f32 -1.442695, %v1510_v33 }
  0xf4   : > { %1224 = vpow2.f32 %v1028_v31  ;;  %v1037_v40 = vmul.f32 -1.442695, %v1515_v37 }
  0xf5   : > { %1226 = vpow2.f32 %v1036_v35  ;;  %v1105_v41 = vpop.f32.mrb[4].mxu0 }
  0xf6   : > { %1228 = vpow2.f32 %v1031_v36  ;;  %v1521_v42 = vadd.f32 %v1105_v41, %v1486_v16  ;;  %v1113_v43 = vpop.f32.mrb[4].mxu1  ;;  %v435_v44 = vpop.f32.mrb[5].mxu0 }
  0xf7   : > { %1230 = vpow2.f32 %v1039_v38  ;;  %v1524_v45 = vadd.f32 %v1113_v43, %v1486_v16  ;;  %v1527_v46 = vadd.f32 %v1486_v16, %v435_v44  ;;  %v467_v47 = vpop.f32.mrb[5].mxu1  ;;  %v1106_v48 = vpop.f32.mrb[6].mxu0 }
  0xf8   : > { %1232 = vpow2.f32 %v1029_v39  ;;  %v1034_v49 = vmul.f32 -1.442695, %v1521_v42  ;;  %v1531_v50 = vadd.f32 %v1486_v16, %v467_v47  ;;  %v1534_v51 = vadd.f32 %v1106_v48, %v1486_v16  ;;  %v1114_v52 = vpop.f32.mrb[6].mxu1  ;;  %v438_v53 = vpop.f32.mrb[7].mxu0 }
  0xf9   : > { %1234 = vpow2.f32 %v1037_v40  ;;  %v1042_v54 = vmul.f32 -1.442695, %v1524_v45  ;;  %v1032_v55 = vmul.f32 -1.442695, %v1527_v46  ;;  %v470_v56 = vpop.f32.mrb[7].mxu1  ;;  %v1541_v17 = vadd.f32 %v1114_v52, %v1486_v16 }
  0xfa   : > { %1236 = vpow2.f32 %v1034_v49  ;;  %v1040_v57 = vmul.f32 -1.442695, %v1531_v50  ;;  %v1035_v58 = vmul.f32 -1.442695, %v1534_v51  ;;  %v1544_v23 = vadd.f32 %v1486_v16, %v438_v53 }
  0xfb   : > { %1238 = vpow2.f32 %v1042_v54  ;;  %v1552_v29 = vadd.f32 %v1486_v16, %v470_v56  ;;  %v1043_v39 = vmul.f32 -1.442695, %v1541_v17 }
  0xfc   : > { %v1221_v59 = vpop.eup %1220  ;;  %1240 = vpow2.f32 %v1032_v55  ;;  %v1033_v16 = vmul.f32 -1.442695, %v1544_v23 }
  0xfd   : > { %v1223_v60 = vpop.eup %1222  ;;  %v652_v61 = vadd.f32 1.0, %v1221_v59  ;;  %1242 = vpow2.f32 %v1040_v57  ;;  %v1041_v52 = vmul.f32 -1.442695, %v1552_v29 }
  0xfe   : > { %v1225_v62 = vpop.eup %1224  ;;  %v660_v63 = vadd.f32 1.0, %v1223_v60  ;;  %1244 = vpow2.f32 %v1035_v58  ;;  %v1121_v0 = vpop.f32.mrb[8].mxu1 }
  0xff   : > { %v1227_v1 = vpop.eup %1226  ;;  %1246 = vrcp.f32 %v652_v61  ;;  %v650_v2 = vadd.f32 1.0, %v1225_v62  ;;  %v539_v3 = vpop.f32.mrb[9].mxu1  ;;  %v548_v40 = vadd.f32 %v1121_v0, %v1549_v24 }
 0x100   : > { %v1229_v4 = vpop.eup %1228  ;;  %1248 = vrcp.f32 %v660_v63  ;;  %v658_v5 = vadd.f32 1.0, %v1227_v1  ;;  %v1122_v6 = vpop.f32.mrb[10].mxu1  ;;  %v540_v53 = vadd.f32 %v1549_v24, %v539_v3 }
 0x101   : > { %v1231_v7 = vpop.eup %1230  ;;  %1250 = vrcp.f32 %v650_v2  ;;  %v653_v8 = vadd.f32 1.0, %v1229_v4  ;;  %v542_v9 = vpop.f32.mrb[11].mxu1 }
 0x102   : > { %v1233_v10 = vpop.eup %1232  ;;  %1252 = vrcp.f32 %v658_v5  ;;  %v661_v11 = vadd.f32 1.0, %v1231_v7  ;;  %v543_v1 = vadd.f32 %v1549_v24, %v542_v9 }
 0x103   : > { %v1235_v12 = vpop.eup %1234  ;;  %1254 = vrcp.f32 %v653_v8  ;;  %v651_v13 = vadd.f32 1.0, %v1233_v10 }
 0x104   : > { %v1237_v14 = vpop.eup %1236  ;;  %1256 = vrcp.f32 %v661_v11  ;;  %v659_v15 = vadd.f32 1.0, %v1235_v12 }
 0x105   : > { %v1239_v19 = vpop.eup %1238  ;;  %1258 = vrcp.f32 %v651_v13  ;;  %v656_v20 = vadd.f32 1.0, %v1237_v14 }
 0x106   : > { %v1241_v25 = vpop.eup %1240  ;;  %1260 = vrcp.f32 %v659_v15  ;;  %v664_v28 = vadd.f32 1.0, %v1239_v19  ;;  %v1125_v30 = vpop.f32.mrb[12].mxu1 }
 0x107   : > { %v1243_v31 = vpop.eup %1242  ;;  %1262 = vrcp.f32 %v656_v20  ;;  %v654_v34 = vadd.f32 1.0, %v1241_v25  ;;  %v555_v35 = vpop.f32.mrb[13].mxu1  ;;  %v564_v2 = vadd.f32 %v1125_v30, %v1549_v24 }
 0x108   : > { %v1245_v36 = vpop.eup %1244  ;;  %1264 = vrcp.f32 %v664_v28  ;;  %v662_v38 = vadd.f32 1.0, %v1243_v31  ;;  %v1556_v41 = vpop.f32.mrb[14].mxu1 }
 0x109   : > { %v1247_v43 = vpop.eup %1246  ;;  %1266 = vrcp.f32 %v654_v34  ;;  %v657_v44 = vadd.f32 1.0, %v1245_v36  ;;  %v1559_v47 = vpop.f32.mrb[15].mxu1 }
 0x10a   : > { %v1249_v48 = vpop.eup %1248  ;;  %v700_v49 = vmul.f32 %v1247_v43, %v1489_v18  ;;  %1268 = vrcp.f32 %v662_v38  ;;  %v551_v18 = vadd.f32 %v1122_v6, %v1549_v24 }
 0x10b   : > { %v1251_v54 = vpop.eup %1250  ;;  %1270 = vrcp.f32 %v657_v44  ;;  %v708_v0 = vmul.f32 %v1249_v48, %v1492_v21  ;;  %v556_v21 = vadd.f32 %v1549_v24, %v555_v35 }
 0x10c   : > { %v1253_v55 = vpop.eup %1252  ;;  %v698_v56 = vmul.f32 %v1251_v54, %v1495_v22  ;;  %1272 = vpow2.f32 %v1043_v39  ;;  %v716_v57 = vmul.f32 %v700_v49, %v548_v40 }
 0x10d   : > { %v1255_v58 = vpop.eup %1254  ;;  %1274 = vpow2.f32 %v1033_v16  ;;  %v706_v5 = vmul.f32 %v1253_v55, %v1499_v26 }
 0x10e   : > { %v1257_v59 = vpop.eup %1256  ;;  %v701_v60 = vmul.f32 %v1255_v58, %v1502_v27  ;;  %1276 = vpow2.f32 %v1041_v52  ;;  %v714_v61 = vmul.f32 %v698_v56, %v540_v53  ;;  %v1129_v62 = vpop.f32.mrb[16].mxu1 }
 0x10f   : > { %v1259_v63 = vpop.eup %1258  ;;  %v580_v22 = vadd.f32 %v1129_v62, %v1549_v24  ;;  %v571_v3 = vpop.f32.mrb[17].mxu1  ;;  %v709_v11 = vmul.f32 %v1257_v59, %v1507_v32 }
 0x110   : > { %v1261_v4 = vpop.eup %1260  ;;  %v699_v27 = vmul.f32 %v1259_v63, %v1510_v33  ;;  %v717_v7 = vmul.f32 %v701_v60, %v551_v18  ;;  %v572_v8 = vadd.f32 %v1549_v24, %v571_v3  ;;  %v1130_v6 = vpop.f32.mrb[18].mxu1 }
 0x111   : > { %v1263_v10 = vpop.eup %1262  ;;  %v1576_v9 = vmul.f32 %v708_v0, %v580_v22  ;;  %v583_v12 = vadd.f32 %v1130_v6, %v1549_v24  ;;  %v574_v13 = vpop.f32.mrb[19].mxu1  ;;  %v707_v25 = vmul.f32 %v1261_v4, %v1515_v37  ;;  %v567_v37 = vadd.f32 %v1556_v41, %v1549_v24 }
 0x112   : > { %v1265_v14 = vpop.eup %1264  ;;  %v704_v15 = vmul.f32 %v1263_v10, %v1521_v42  ;;  %v731_v26 = vpack.c.bf16 %v717_v7, %v716_v57  ;;  %v715_v19 = vmul.f32 %v699_v27, %v543_v1  ;;  %v722_v33 = vmul.f32 %v706_v5, %v572_v8 }
 0x113   : > { %v1267_v20 = vpop.eup %1266  ;;  %v725_v28 = vmul.f32 %v709_v11, %v583_v12  ;;  %v575_v30 = vadd.f32 %v1549_v24, %v574_v13  ;;  %v712_v48 = vmul.f32 %v1265_v14, %v1524_v45  ;;  %v559_v22 = vadd.f32 %v1549_v24, %v1559_v47 }
 0x114   : > { %v1269_v32 = vpop.eup %1268  ;;  %v702_v31 = vmul.f32 %v1267_v20, %v1527_v46  ;;  %v730_v34 = vpack.c.bf16 %v715_v19, %v714_v61  ;;  %v720_v35 = vmul.f32 %v704_v15, %v564_v2 }
 0x115   : > { %v1271_v36 = vpop.eup %1270  ;;  %v735_v38 = vpack.c.bf16 %v725_v28, %v1576_v9  ;;  %v723_v39 = vmul.f32 %v707_v25, %v575_v30 }
 0x116   : > { %v1273_v42 = vpop.eup %1272  ;;  %v705_v40 = vmul.f32 %v1271_v36, %v1534_v51  ;;  %v718_v43 = vmul.f32 %v702_v31, %v556_v21  ;;  %1143 = vmatprep.mubr.msk.bf16.mxu0 %vm777_vm1, %v730_v34  ;;  %v1133_v44 = vpop.f32.mrb[20].mxu1  ;;  %v710_v51 = vmul.f32 %v1269_v32, %v1531_v50 }
 0x117   : > { %v1275_v16 = vpop.eup %1274  ;;  %v665_v46 = vadd.f32 1.0, %v1273_v42  ;;  %v734_v49 = vpack.c.bf16 %v723_v39, %v722_v33  ;;  %1144 = vmatmul.mubr.msk.bf16.vlgmr.msra.gmra.mrb[8].mxu0 %vm777_vm1, %v731_v26  ;;  %v596_v52 = vadd.f32 %v1133_v44, %v1549_v24  ;;  %v587_v53 = vpop.f32.mrb[21].mxu1 }
 0x118   : > { %v1277_v54 = vpop.eup %1276  ;;  %v655_v55 = vadd.f32 1.0, %v1275_v16  ;;  %v721_v56 = vmul.f32 %v705_v40, %v567_v37  ;;  %v588_v41 = vadd.f32 %v1549_v24, %v587_v53  ;;  %v1134_v57 = vpop.f32.mrb[22].mxu1 }
 0x119   : > { %1278 = vrcp.f32 %v665_v46  ;;  %v663_v58 = vadd.f32 1.0, %v1277_v54  ;;  %v728_v59 = vmul.f32 %v712_v48, %v596_v52  ;;  %v590_v60 = vpop.f32.mrb[23].mxu1  ;;  %v599_v18 = vadd.f32 %v1134_v57, %v1549_v24 }
 0x11a   : > { %1280 = vrcp.f32 %v655_v55  ;;  %v733_v45 = vpack.c.bf16 %v721_v56, %v720_v35  ;;  %v726_v61 = vmul.f32 %v710_v51, %v588_v41  ;;  %v591_v50 = vadd.f32 %v1549_v24, %v590_v60 }
 0x11b   : > { %1282 = vrcp.f32 %v663_v58 }
 0x123   : > { %v1279_v62 = vpop.eup %1278 }
 0x124   : > { %v1281_v63 = vpop.eup %1280  ;;  %v713_v0 = vmul.f32 %v1279_v62, %v1541_v17  ;;  %v1044_v17 = vld [vmem:[%s1688_s6] ss:$0 sm:$0xff] }
 0x125   : > { %v1283_v1 = vpop.eup %1282  ;;  %v703_v2 = vmul.f32 %v1281_v63, %v1544_v23 }
 0x126   : > { %v711_v3 = vmul.f32 %v1283_v1, %v1552_v29  ;;  %v729_v4 = vmul.f32 %v713_v0, %v599_v18 }
 0x127   : > { %v719_v5 = vmul.f32 %v703_v2, %v559_v22 }
 0x128   : > { %v737_v27 = vpack.c.bf16 %v729_v4, %v728_v59  ;;  %v727_v7 = vmul.f32 %v711_v3, %v591_v50 }
 0x129   : > { %v732_v8 = vpack.c.bf16 %v719_v5, %v718_v43 }
 0x12a   : > { %v736_v6 = vpack.c.bf16 %v727_v7, %v726_v61 }
 0x12b   : > { %1147 = vmatprep.mubr.msk.bf16.mxu0 %vm777_vm1, %v732_v8 }
 0x12c   : > { %1148 = vmatmul.mubr.msk.bf16.gmra.mrb[12].mxu0 %vm777_vm1, %v733_v45 }
 0x12d   : > { %1151 = vmatprep.mubr.msk.bf16.mxu0 %vm777_vm1, %v734_v49 }
 0x134   : > { %1152 = vmatmul.mubr.msk.bf16.gmra.mrb[16].mxu0 %vm777_vm1, %v735_v38 }
 0x135   : > { %1155 = vmatprep.mubr.msk.bf16.mxu0 %vm777_vm1, %v736_v6 }
 0x13c   : > { %1156 = vmatmul.mubr.msk.bf16.gmra.mrb[20].mxu0 %vm777_vm1, %v737_v27 }
 0x1ea   : > { %v1145_v23 = vpop.f32.mrb[8].mxu0 }
 0x1eb   : > { %v845_v24 = vadd.f32 %v1145_v23, %v1044_v17  ;;  %v836_v29 = vpop.f32.mrb[9].mxu0 }
 0x1ec   : > { %v837_v47 = vadd.f32 %v1044_v17, %v836_v29  ;;  %v1146_v10 = vpop.f32.mrb[10].mxu0 }
 0x1ed   : > { %901 = vst [vmem:[%s1612_s14 + $0x10] sm:$0xff] %v845_v24  ;;  %v848_v11 = vadd.f32 %v1146_v10, %v1044_v17  ;;  %v839_v21 = vpop.f32.mrb[11].mxu0 }
 0x1ee   : > { %899 = vst [vmem:[%s1612_s14] sm:$0xff] %v837_v47  ;;  %v840_v9 = vadd.f32 %v1044_v17, %v839_v21 }
 0x1ef   : > { %902 = vst [vmem:[%s1612_s14 + $0x18] sm:$0xff] %v848_v11 }
 0x1f0   : > { %900 = vst [vmem:[%s1612_s14 + $0x8] sm:$0xff] %v840_v9 }
 0x1ff   : > { %v1149_v12 = vpop.f32.mrb[12].mxu0 }
 0x200   : > { %v861_v13 = vadd.f32 %v1149_v12, %v1044_v17  ;;  %v852_v14 = vpop.f32.mrb[13].mxu0 }
 0x201   : > { %v853_v15 = vadd.f32 %v1044_v17, %v852_v14  ;;  %v1150_v26 = vpop.f32.mrb[14].mxu0 }
 0x202   : > { %905 = vst [vmem:[%s1612_s14 + $0x30] sm:$0xff] %v861_v13  ;;  %v864_v19 = vadd.f32 %v1150_v26, %v1044_v17  ;;  %v855_v33 = vpop.f32.mrb[15].mxu0 }
 0x203   : > { %903 = vst [vmem:[%s1612_s14 + $0x20] sm:$0xff] %v853_v15  ;;  %v856_v20 = vadd.f32 %v1044_v17, %v855_v33 }
 0x204   : > { %906 = vst [vmem:[%s1612_s14 + $0x38] sm:$0xff] %v864_v19 }
 0x205   : > { %904 = vst [vmem:[%s1612_s14 + $0x28] sm:$0xff] %v856_v20 }
 0x207   : > { %v1153_v25 = vpop.f32.mrb[16].mxu0 }
 0x208   : > { %v877_v28 = vadd.f32 %v1153_v25, %v1044_v17  ;;  %v868_v30 = vpop.f32.mrb[17].mxu0 }
 0x209   : > { %v869_v32 = vadd.f32 %v1044_v17, %v868_v30  ;;  %v1154_v31 = vpop.f32.mrb[18].mxu0 }
 0x20a   : > { %909 = vst [vmem:[%s1612_s14 + $0x50] sm:$0xff] %v877_v28  ;;  %v880_v34 = vadd.f32 %v1154_v31, %v1044_v17  ;;  %v871_v35 = vpop.f32.mrb[19].mxu0 }
 0x20b   : > { %907 = vst [vmem:[%s1612_s14 + $0x40] sm:$0xff] %v869_v32  ;;  %v872_v36 = vadd.f32 %v1044_v17, %v871_v35 }
 0x20c   : > { %910 = vst [vmem:[%s1612_s14 + $0x58] sm:$0xff] %v880_v34 }
 0x20d   : > { %908 = vst [vmem:[%s1612_s14 + $0x48] sm:$0xff] %v872_v36 }
 0x20f   : > { %v1157_v38 = vpop.f32.mrb[20].mxu0 }
 0x210   : > { %v893_v39 = vadd.f32 %v1157_v38, %v1044_v17  ;;  %v884_v42 = vpop.f32.mrb[21].mxu0 }
 0x211   : > { %v885_v40 = vadd.f32 %v1044_v17, %v884_v42  ;;  %v1158_v43 = vpop.f32.mrb[22].mxu0 }
 0x212   : > { %913 = vst [vmem:[%s1612_s14 + $0x70] sm:$0xff] %v893_v39  ;;  %v896_v37 = vadd.f32 %v1158_v43, %v1044_v17  ;;  %v887_v44 = vpop.f32.mrb[23].mxu0 }
 0x213   : > { %911 = vst [vmem:[%s1612_s14 + $0x60] sm:$0xff] %v885_v40  ;;  %v888_v16 = vadd.f32 %v1044_v17, %v887_v44 }
 0x214   : > { %914 = vst [vmem:[%s1612_s14 + $0x78] sm:$0xff] %v896_v37 }
 0x215   : > { %912 = vst [vmem:[%s1612_s14 + $0x68] sm:$0xff] %v888_v16 }
 0x216   : > { %1297 = shalt.err (!%p1294_p3)
}
 0x217   : > { %s1298_s29 = scalar_lea.hbm %s1632_s19, 2048  ;;  %s1302_s13 = scalar_lea.hbm %s1689_s7, 4096 }
 0x218   : > { %p1299_p4 = scmp.ne.s32.totalorder %s1632_s19, %s1298_s29  ;;  %p1303_p9 = scmp.lt.u32.totalorder %s1632_s19, %s1689_s7 }
 0x219   : > { %p1304_p10 = scmp.lt.u32.totalorder %s1302_s13, %s1298_s29  ;;  %p1306_p12 = scmp.lt.u32.totalorder %s1298_s29, %s1632_s19 }
 0x21a   : > { %p1300_p7 = pnand %p1299_p4, %p1429_p5 }
 0x21b   : > { %p1305_p11 = por %p1304_p10, %p1303_p9 }
 0x21c   : > { %p1301_p8 = pneg %p1300_p7 }
 0x21d   : > { %p1307_p13 = por %p1306_p12, %p1305_p11 }
 0x21f   : > { %p1308_p0 = pnand %p1307_p13, %p1301_p8 }
 0x221   : > { %1311 = shalt.err (!%p1308_p0)
}
 0x222   : > { %s1349_s17 = smov 128   ;;  %s1350_s18 = smov 8  }
 0x223   : > { %1163 = dma.vmem_to_hbm [thread:$0]  (%p1429_p5), %s1634_s16, 2048, %s1632_s19, %s1641_s28, %s1349_s17, %s1349_s17, %s1350_s18  }
 0x224 PF: > { %p1169_p1 = scmp.ge.s32.totalorder %s1346_s27, 2  ;;  %s944_s20 = sand.u32 1, %s1334_s24  }
 0x225   : > { %s945_s21 = scalar_lea.sflag [#allocation3], %s944_s20 }
 0x226   : > { %p1166_p2 = pnand %p1169_p1, %p1433_p6 }
 0x228   : > { %1329 = dma.done.wait (!%p1166_p2), %s945_s21, 2048  }
 0x229   : > { %1331 = vsyncadd (!%p1166_p2), %s945_s21, 4294965248  ;;  %p17_p3 = scmp.ge.s32.totalorder %s1416_s30, 4   ;;  %s1692_s24 = smov %s1338_s25 }
 0x22a   : > { %s1693_s25 = smov %s1342_s26  ;;  %s1694_s26 = smov %s1427_s10 }
 0x22b   : > { %s1695_s27 = smov %s1416_s30  ;;  %19 = sbr.rel (!%p17_p3) target bundleno = 3 (0x3), region = 83 }
 0x232   :  { %950 = vsyncpa [#allocation3], 1 }
 0x233   :  { %952 = vsyncpa [#allocation3 + $0x1], 1 }

</bundles_post_ra>
